<compile_context>
chip_gen: v6e
topology: v6e:2x2x1
jax: 0.10.0
libtpu: 0.0.40
codegen_flags: <defaults>
</compile_context>

<pallas_src>
import jax
import jax.numpy as jnp
from jax.experimental import pallas as pl
from jax.experimental.pallas import tpu as pltpu


def _conv_bn_relu_kernel(x_ref, w_ref, shift_ref, o_ref):
    # x_ref:     (C_in, TILE_N)    one batch element's N-tile (NCW layout)
    # w_ref:     (C_out, C_in)     conv weight with BN scale pre-folded
    # shift_ref: (C_out, 1)        folded BN shift = beta - mean * scale
    # o_ref:     (C_out, TILE_N)
    y = jnp.dot(w_ref[...], x_ref[...], preferred_element_type=jnp.float32)
    y = y + shift_ref[...]
    o_ref[...] = jnp.maximum(y, 0.0).astype(o_ref.dtype)


def _pick_tile_n(n):
    # Largest lane-dense tile (multiple of 128) that divides N exactly; fall
    # back to the full extent (always a legal block shape) for small/odd N.
    for t in (4096, 2048, 1024, 512, 256, 128):
        if n % t == 0:
            return t
    # TODO(synk): for large N not divisible by 128, a masked remainder tile
    # (grid = pl.cdiv) would bound VMEM better than a full-extent block.
    return n


def pn_1layer_forward(x_ncw, w_oc, gamma, beta, run_mean, run_var, eps=1e-5):
    """x_ncw: (B, 3, N) float32.  Returns (B, 64, N) float32 (PyTorch NCW)."""
    B, C_in, N = x_ncw.shape
    C_out = w_oc.shape[0]

    # Fold eval-mode BN into the conv weight (scale) and a per-channel shift:
    #   scale * (W @ x) + shift  ==  (scale * W) @ x + shift
    scale = gamma / jnp.sqrt(run_var + eps)            # (C_out,)
    shift = beta - run_mean * scale                    # (C_out,)
    w_folded = (w_oc * scale[:, None]).astype(jnp.float32)  # (C_out, C_in)
    shift_col = shift.reshape(C_out, 1).astype(jnp.float32)

    tile_n = _pick_tile_n(N)
    grid = (B, N // tile_n)

    out = pl.pallas_call(
        _conv_bn_relu_kernel,
        out_shape=jax.ShapeDtypeStruct((B, C_out, N), jnp.float32),
        grid_spec=pltpu.PrefetchScalarGridSpec(
            num_scalar_prefetch=0,
            grid=grid,
            in_specs=[
                # x: one (3, TILE_N) slice per (b, n) grid step; batch axis squeezed.
                pl.BlockSpec((None, C_in, tile_n), lambda b, n: (b, 0, n)),
                # Folded weight: resident in VMEM for the whole grid.
                pl.BlockSpec((C_out, C_in), lambda b, n: (0, 0)),
                # Folded shift: resident in VMEM for the whole grid.
                pl.BlockSpec((C_out, 1), lambda b, n: (0, 0)),
            ],
            out_specs=pl.BlockSpec((None, C_out, tile_n), lambda b, n: (b, 0, n)),
        ),
        compiler_params=pltpu.CompilerParams(
            dimension_semantics=("parallel", "parallel"),
        ),
    )(x_ncw, w_folded, shift_col)

    return out


if __name__ == "__main__":
    key = jax.random.PRNGKey(0)
    k_x, k_w, k_g, k_b, k_m, k_v = jax.random.split(key, 6)

    B, C_in, N, C_out = 2, 3, 256, 64
    eps = 1e-5

    # Deterministic synthetic parameters (Conv1d(3, 64, 1, bias=False) weight
    # is (64, 3, 1) in PyTorch; kernel-size-1 axis squeezed to (64, 3)).
    x = jax.random.normal(k_x, (B, C_in, N), dtype=jnp.float32)
    w = jax.random.normal(k_w, (C_out, C_in), dtype=jnp.float32) * 0.1
    gamma = 1.0 + 0.05 * jax.random.normal(k_g, (C_out,), dtype=jnp.float32)
    beta = 0.05 * jax.random.normal(k_b, (C_out,), dtype=jnp.float32)
    run_mean = 0.05 * jax.random.normal(k_m, (C_out,), dtype=jnp.float32)
    run_var = jnp.abs(1.0 + 0.05 * jax.random.normal(k_v, (C_out,), dtype=jnp.float32))

    out = pn_1layer_forward(x, w, gamma, beta, run_mean, run_var, eps=eps)
    jax.block_until_ready(out)

    # Pure-JAX reference (eval-mode BN), same math as the kernel.
    scale = gamma / jnp.sqrt(run_var + eps)
    shift = beta - run_mean * scale
    y_ref = jnp.einsum("oc,bcn->bon", w, x)
    y_ref = y_ref * scale[None, :, None] + shift[None, :, None]
    y_ref = jnp.maximum(y_ref, 0.0)

    assert out.shape == (B, C_out, N), out.shape
    assert bool(jnp.all(out >= 0.0))
    assert bool(jnp.allclose(out, y_ref, rtol=1e-5, atol=1e-5)), (
        float(jnp.max(jnp.abs(out - y_ref)))
    )

    print("KERNEL_OK")
</pallas_src>

<mosaic_0001>
module attributes {stable_mosaic.version = 11 : i64} {
  func.func @_conv_bn_relu_kernel(%arg0: i32, %arg1: i32, %arg2: memref<1x3x256xf32, #tpu.memory_space<vmem>>, %arg3: memref<64x3xf32, #tpu.memory_space<vmem>>, %arg4: memref<64x1xf32, #tpu.memory_space<vmem>>, %arg5: memref<1x64x256xf32, #tpu.memory_space<vmem>>) attributes {dimension_semantics = [#tpu.dimension_semantics<parallel>, #tpu.dimension_semantics<parallel>], iteration_bounds = array<i64: 2, 1>, scalar_prefetch = 0 : i64, scratch_operands = 0 : i64, tpu.core_type = #tpu.core_type<tc>, window_params = [{transform_indices = @transform_0, window_bounds = array<i64: 1, 3, 256>}, {pipeline_mode = #tpu.pipeline_mode<synchronous>, transform_indices = @transform_1, window_bounds = array<i64: 64, 3>}, {pipeline_mode = #tpu.pipeline_mode<synchronous>, transform_indices = @transform_2, window_bounds = array<i64: 64, 1>}, {transform_indices = @transform_3, window_bounds = array<i64: 1, 64, 256>}]} {
    %c0 = arith.constant 0 : index
    %c0_0 = arith.constant 0 : index
    %0 = vector.load %arg3[%c0, %c0_0] : memref<64x3xf32, #tpu.memory_space<vmem>>, vector<64x3xf32>
    %c0_1 = arith.constant 0 : index
    %c0_2 = arith.constant 0 : index
    %c0_3 = arith.constant 0 : index
    %1 = vector.load %arg2[%c0_1, %c0_2, %c0_3] : memref<1x3x256xf32, #tpu.memory_space<vmem>>, vector<1x3x256xf32>
    %2 = vector.shape_cast %1 : vector<1x3x256xf32> to vector<3x256xf32>
    %cst = arith.constant dense<0.000000e+00> : vector<64x256xf32>
    %3 = tpu.matmul %0, %2, %cst {dimension_numbers = #tpu.dot_dimension_numbers<[1], [0], [0], [1], [0, 0, 1, 1], [], []>} : vector<64x3xf32>, vector<3x256xf32>, vector<64x256xf32> -> vector<64x256xf32>
    %c0_4 = arith.constant 0 : index
    %c0_5 = arith.constant 0 : index
    %4 = vector.load %arg4[%c0_4, %c0_5] : memref<64x1xf32, #tpu.memory_space<vmem>>, vector<64x1xf32>
    %5 = vector.broadcast %4 : vector<64x1xf32> to vector<64x256xf32>
    %6 = arith.addf %3, %5 : vector<64x256xf32>
    %cst_6 = arith.constant 0.000000e+00 : f32
    %7 = vector.broadcast %cst_6 : f32 to vector<64x256xf32>
    %8 = arith.maximumf %6, %7 : vector<64x256xf32>
    %c0_7 = arith.constant 0 : index
    %c0_8 = arith.constant 0 : index
    %c0_9 = arith.constant 0 : index
    %9 = vector.load %arg5[%c0_7, %c0_8, %c0_9] : memref<1x64x256xf32, #tpu.memory_space<vmem>>, vector<1x64x256xf32>
    %10 = vector.shape_cast %9 : vector<1x64x256xf32> to vector<64x256xf32>
    %11 = vector.shape_cast %8 : vector<64x256xf32> to vector<1x64x256xf32>
    tpu.vector_store %arg5[%c0_7, %c0_8, %c0_9], %11 {strides = array<i32>} : memref<1x64x256xf32, #tpu.memory_space<vmem>>, vector<1x64x256xf32>,
    return
  }
  func.func @transform_0(%arg0: i32, %arg1: i32) -> (i32, i32, i32) {
    %c0_i32 = arith.constant 0 : i32
    %c0_i32_0 = arith.constant 0 : i32
    return %arg0, %c0_i32, %arg1 : i32, i32, i32
  }
  func.func @transform_1(%arg0: i32, %arg1: i32) -> (i32, i32) {
    %c0_i32 = arith.constant 0 : i32
    %c0_i32_0 = arith.constant 0 : i32
    %c0_i32_1 = arith.constant 0 : i32
    return %c0_i32, %c0_i32_0 : i32, i32
  }
  func.func @transform_2(%arg0: i32, %arg1: i32) -> (i32, i32) {
    %c0_i32 = arith.constant 0 : i32
    %c0_i32_0 = arith.constant 0 : i32
    %c0_i32_1 = arith.constant 0 : i32
    return %c0_i32, %c0_i32_0 : i32, i32
  }
  func.func @transform_3(%arg0: i32, %arg1: i32) -> (i32, i32, i32) {
    %c0_i32 = arith.constant 0 : i32
    %c0_i32_0 = arith.constant 0 : i32
    return %arg0, %c0_i32, %arg1 : i32, i32, i32
  }
}

</mosaic_0001>

<bundles_post_ra>
// kernel: tpu_custom_call.1
= control target key start
LH: loop header
LB: loop body
LE: loop exit
PB: predicated region body
PF: predicated region fallthrough
CT: control target
= control target key end

     0   :  { %8 = vsyncpa [#allocation3], 0  ;;  %s918_s0 = inlined_call_operand.vmem [shape: f32[2,3,256], index: 0, kind: input, shape index: {}]   ;;  %s919_s1 = inlined_call_operand.vmem [shape: f32[64,3], index: 1, kind: input, shape index: {}]   ;;  %s920_s2 = inlined_call_operand.vmem [shape: f32[64,1], index: 2, kind: input, shape index: {}]   ;;  %s921_s3 = inlined_call_operand.hbm [shape: f32[2,64,256], index: 3, kind: output, shape index: {}]  }
   0x1   :  { %10 = vsyncpa [#allocation3 + $0x1], 0  ;;  %s721_s12 = smov 0   ;;  %s723_s13 = smov 0  }
   0x2   :  { %s725_s14 = smov 0   ;;  %s727_s15 = smov 0  }
   0x3   :  { %s729_s16 = smov 0   ;;  %s731_s17 = smov 0  }
   0x4 LB: > { %s529_s18 = sadd.s32 4294967295, %s694_s17   ;;  %s530_s19 = sadd.s32 4294967294, %s694_s17   ;;  %s694_s17 = sphi %s731_s17, %s16_s17   ;;  %s690_s16 = sphi %s729_s16, %s928_s16   ;;  %s686_s15 = sphi %s727_s15, %s927_s15   ;;  %s682_s14 = sphi %s725_s14, %s926_s14   ;;  %s678_s13 = sphi %s723_s13, %s925_s13   ;;  %s674_s12 = sphi %s721_s12, %s924_s12  }
   0x5   : > { %s28_s20 = sadd.s32 1, %s690_s16  ;;  %s107_s21 = sadd.s32 1, %s682_s14 }
   0x6   : > { %p30_p0 = scmp.ge.s32.totalorder %s28_s20, 2  ;;  %p117_p1 = scmp.ne.s32.totalorder %s682_s14, %s678_s13 }
   0x7   : > { %p118_p2 = scmp.eq.s32.totalorder %s529_s18, 1  ;;  %p123_p3 = scmp.ne.s32.totalorder %s678_s13, %s674_s12 }
   0x8   : > { %s930_s20 = smov (%p30_p0, %s28_s20), 0  ;;  %p124_p5 = scmp.eq.s32.totalorder %s530_s19, 1 }
   0x9   : > { %p761_p4 = por %p118_p2, %p117_p1  ;;  %s102_s23 = ssub.s32 %s690_s16, %s930_s20 }
   0xa   : > { %p533_p6 = scmp.ge.s32.totalorder %s694_s17, 1  ;;  %p105_p7 = scmp.eq.s32.totalorder %s102_s23, 0 }
   0xb   : > { %p768_p8 = por %p124_p5, %p123_p3  ;;  %p161_p9 = scmp.lt.s32.totalorder %s694_s17, 3 }
   0xc   : > { %s774_s25 = scalar_select %p105_p7, %s682_s14, %s107_s21  }
   0xd   : > { %p162_p10 = pnand %p533_p6, %p161_p9 }
   0xe   : > { %p190_p11 = scmp.lt.s32.totalorder (!%p162_p10), %s686_s15, 1  ;;  %s186_s29 = sand.u32 (!%p162_p10), 1, %s678_s13  }
   0xf   : > { %165 = sbr.rel (%p162_p10) target bundleno = 255 (0xff), region = 32  ;;  %s534_s30 = sshll.u32 (!%p162_p10), %s186_s29, 7 }
  0x10   : > { %s553_s5 = sshll.u32 (!%p162_p10), %s686_s15, 11  ;;  %s698_s11 = smov (!%p162_p10), [#allocation2]  }
  0x11   : > { %s863_s9 = scalar_lea.hbm (!%p162_p10), %s921_s3, %s553_s5  ;;  %s622_s18 = sshll.u32 (!%p162_p10), %s698_s11, 4  ;;  %s623_s18 = int_to_ptr.vmem [resolvable:$false] %s622_s18 }
  0x12   : > { %s624_s19 = scalar_lea.vmem (!%p162_p10), %s623_s18, 4096 }
  0x14   : > { %v696_v0 = vmov 0.0   ;;  %s191_s26 = scalar_select %p190_p11, %s686_s15, 1  ;;  %v697_v1 = vmov 0   ;;  %v211_v2 = vld [vmem:[%s920_s2 + $0x10] sm:$0xff]  ;;  %v209_v3 = vld [vmem:[%s920_s2] sm:$0xff]  ;;  %v212_v4 = vld [vmem:[%s920_s2 + $0x18] sm:$0xff] }
  0x15   : > { %353 = vmatprep.mubr.f32.mxu0 %v696_v0  ;;  %377 = vmatprep.mubr.f32.mxu1 %v696_v0  ;;  %v210_v5 = vld [vmem:[%s920_s2 + $0x8] sm:$0xff]  ;;  %vm284_vm0 = vcmask 1042432   ;;  %v200_v8 = vld [vmem:[%s919_s1] sm:$0xff]  ;;  %vm259_vm1 = vcmask 23552   ;;  %v216_v14 = vld [vmem:[%s920_s2 + $0x38] sm:$0xff]  ;;  %s873_s15 = scalar_lea.sflag [#allocation3], %s186_s29 }
  0x16   : > { %616 = vset.pattern.permute.xlu1 %v697_v1  ;;  %615 = vset.pattern.permute.xlu0 %v697_v1  ;;  %s552_s4 = sshll.u32 %s191_s26, 3  ;;  %v204_v9 = vld [vmem:[%s919_s1 + $0x20] sm:$0xff]  ;;  %v214_v10 = vld [vmem:[%s920_s2 + $0x28] sm:$0xff]  ;;  %v215_v15 = vld [vmem:[%s920_s2 + $0x30] sm:$0xff] }
  0x17   : > { %229 = vperm.xlu1 %616, %v211_v2   ;;  %219 = vperm.xlu0 %615, %v209_v3   ;;  %s197_s7 = scalar_lea.vmem %s918_s0, %s552_s4  ;;  %v213_v11 = vld [vmem:[%s920_s2 + $0x20] sm:$0xff]  ;;  %v201_v12 = vld [vmem:[%s919_s1 + $0x8] sm:$0xff]  ;;  %v202_v16 = vld [vmem:[%s919_s1 + $0x10] sm:$0xff]  ;;  %s842_s4 = scalar_lea.vmem [#allocation2], %s534_s30 }
  0x18   : > { %v208_v6 = vld [vmem:[%s197_s7] sm:$0x77]  ;;  %v205_v13 = vld [vmem:[%s919_s1 + $0x28] sm:$0xff]  ;;  %v206_v17 = vld [vmem:[%s919_s1 + $0x30] sm:$0xff]  ;;  %s450_s6 = sshll.u32 %s842_s4, 4  ;;  %s865_s6 = int_to_ptr.vmem [resolvable:$true] %s450_s6 }
  0x19   : > { %v258_v7 = vcombine.high %v208_v6, %v208_v6  ;;  %v203_v18 = vld [vmem:[%s919_s1 + $0x18] sm:$0xff]  ;;  %s618_s10 = scalar_lea.vmem %s865_s6, 2048  ;;  %p625_p1 = scmp.lt.s32.totalorder %s865_s6, %s623_s18 }
  0x1a   : > { %v207_v19 = vld [vmem:[%s919_s1 + $0x38] sm:$0xff]  ;;  %p619_p12 = scmp.ne.s32.totalorder %s865_s6, %s618_s10  ;;  %p626_p2 = scmp.lt.s32.totalorder %s624_s19, %s618_s10 }
  0x1b   : > { %234 = vperm.xlu1 %616, %v212_v4   ;;  %224 = vperm.xlu0 %615, %v210_v5  }
  0x1c   : > { %537 = vmatprep.subr.msk.mxu0 %vm284_vm0, %v258_v7  ;;  %554 = vmatprep.subr.msk.mxu1 %vm284_vm0, %v258_v7  ;;  %p620_p13 = pnand %p619_p12, %p761_p4  ;;  %p627_p3 = por %p626_p2, %p625_p1 }
  0x1d   : > { %538 = vmatpush1.msk.msra.mxu0 %vm284_vm0, %v208_v6  ;;  %555 = vmatpush1.msk.msra.mxu1 %vm284_vm0, %v208_v6 }
  0x1e   : > { %539 = vmatmul.mubr.msk.f32.vlgmr.msra.gmra.mxu0 %vm259_vm1, %v200_v8  ;;  %543 = vmatmul.mubr.msk.f32.vlgmr.msra.gmra.mxu1 %vm259_vm1, %v204_v9  ;;  %p621_p0 = pneg %p620_p13 }
  0x1f   : > { %359 = vmatprep.mubr.f32.mxu0 %v696_v0  ;;  %383 = vmatprep.mubr.f32.mxu1 %v696_v0 }
  0x20   : > { %244 = vperm.xlu1 %616, %v214_v10   ;;  %239 = vperm.xlu0 %615, %v213_v11   ;;  %p628_p5 = pnand %p627_p3, %p621_p0 }
  0x22   : > { %540 = vmatmul.mubr.msk.f32.gmra.mxu0 %vm259_vm1, %v201_v12  ;;  %544 = vmatmul.mubr.msk.f32.gmra.mxu1 %vm259_vm1, %v205_v13 }
  0x23   : > { %365 = vmatprep.mubr.f32.mxu0 %v696_v0  ;;  %389 = vmatprep.mubr.f32.mxu1 %v696_v0 }
  0x24   : > { %254 = vperm.xlu1 %616, %v216_v14   ;;  %249 = vperm.xlu0 %615, %v215_v15  }
  0x26   : > { %541 = vmatmul.mubr.msk.f32.gmra.mxu0 %vm259_vm1, %v202_v16  ;;  %545 = vmatmul.mubr.msk.f32.gmra.mxu1 %vm259_vm1, %v206_v17 }
  0x27   : > { %371 = vmatprep.mubr.f32.mxu0 %v696_v0  ;;  %395 = vmatprep.mubr.f32.mxu1 %v696_v0 }
  0x2a   : > { %542 = vmatmul.mubr.msk.f32.gmra.mxu0 %vm259_vm1, %v203_v18  ;;  %546 = vmatmul.mubr.msk.f32.gmra.mxu1 %vm259_vm1, %v207_v19 }
  0x92   : > { %v220_v20 = vpop.permute.xlu0 %219  ;;  %v230_v21 = vpop.permute.xlu1 %229 }
  0x96   : > { %v225_v22 = vpop.permute.xlu0 %224  ;;  %v838_v23 = vpop.permute.xlu1 %234 }
  0x9b   : > { %v240_v24 = vpop.permute.xlu0 %239  ;;  %v245_v31 = vpop.permute.xlu1 %244 }
  0x9f   : > { %v250_v44 = vpop.permute.xlu0 %249  ;;  %v255_v57 = vpop.permute.xlu1 %254 }
  0xde   : > { %v355_v25 = vpop.f32.mrf.mxu0  ;;  %v379_v26 = vpop.f32.mrf.mxu1 }
  0xdf   : > { %v356_v27 = vadd.f32 %v355_v25, %v220_v20  ;;  %v380_v28 = vadd.f32 %v379_v26, %v240_v24 }
  0xe0   : > { %v357_v29 = vpop.f32.mrf.mxu0  ;;  %v381_v30 = vpop.f32.mrf.mxu1 }
  0xe1   : > { %v402_v32 = vmax.f32 %v356_v27, 0.0  ;;  %v410_v33 = vmax.f32 %v380_v28, 0.0  ;;  %v358_v34 = vadd.f32 %v357_v29, %v220_v20  ;;  %v382_v35 = vadd.f32 %v381_v30, %v240_v24 }
  0xe2   : > { %v361_v36 = vpop.f32.mrf.mxu0  ;;  %v385_v37 = vpop.f32.mrf.mxu1 }
  0xe3   : > { %418 = vst [vmem:[%s842_s4] sm:$0xff] %v402_v32  ;;  %426 = vst [vmem:[%s842_s4 + $0x40] sm:$0xff] %v410_v33  ;;  %v403_v38 = vmax.f32 %v358_v34, 0.0  ;;  %v411_v39 = vmax.f32 %v382_v35, 0.0  ;;  %v362_v40 = vadd.f32 %v361_v36, %v225_v22  ;;  %v386_v41 = vadd.f32 %v385_v37, %v245_v31 }
  0xe4   : > { %v363_v42 = vpop.f32.mrf.mxu0  ;;  %v387_v43 = vpop.f32.mrf.mxu1 }
  0xe5   : > { %419 = vst [vmem:[%s842_s4 + $0x8] sm:$0xff] %v403_v38  ;;  %427 = vst [vmem:[%s842_s4 + $0x48] sm:$0xff] %v411_v39  ;;  %v404_v45 = vmax.f32 %v362_v40, 0.0  ;;  %v412_v46 = vmax.f32 %v386_v41, 0.0  ;;  %v364_v47 = vadd.f32 %v363_v42, %v225_v22  ;;  %v388_v48 = vadd.f32 %v387_v43, %v245_v31 }
  0xe6   : > { %v367_v49 = vpop.f32.mrf.mxu0  ;;  %v391_v50 = vpop.f32.mrf.mxu1 }
  0xe7   : > { %420 = vst [vmem:[%s842_s4 + $0x10] sm:$0xff] %v404_v45  ;;  %428 = vst [vmem:[%s842_s4 + $0x50] sm:$0xff] %v412_v46  ;;  %v405_v51 = vmax.f32 %v364_v47, 0.0  ;;  %v413_v52 = vmax.f32 %v388_v48, 0.0  ;;  %v368_v53 = vadd.f32 %v367_v49, %v230_v21  ;;  %v392_v54 = vadd.f32 %v391_v50, %v250_v44 }
  0xe8   : > { %v369_v55 = vpop.f32.mrf.mxu0  ;;  %v393_v56 = vpop.f32.mrf.mxu1 }
  0xe9   : > { %421 = vst [vmem:[%s842_s4 + $0x18] sm:$0xff] %v405_v51  ;;  %429 = vst [vmem:[%s842_s4 + $0x58] sm:$0xff] %v413_v52  ;;  %v406_v58 = vmax.f32 %v368_v53, 0.0  ;;  %v414_v59 = vmax.f32 %v392_v54, 0.0  ;;  %v370_v60 = vadd.f32 %v369_v55, %v230_v21  ;;  %v394_v61 = vadd.f32 %v393_v56, %v250_v44 }
  0xea   : > { %v373_v62 = vpop.f32.mrf.mxu0  ;;  %v397_v63 = vpop.f32.mrf.mxu1 }
  0xeb   : > { %422 = vst [vmem:[%s842_s4 + $0x20] sm:$0xff] %v406_v58  ;;  %430 = vst [vmem:[%s842_s4 + $0x60] sm:$0xff] %v414_v59  ;;  %v407_v0 = vmax.f32 %v370_v60, 0.0  ;;  %v415_v1 = vmax.f32 %v394_v61, 0.0  ;;  %v374_v2 = vadd.f32 %v373_v62, %v838_v23  ;;  %v398_v3 = vadd.f32 %v397_v63, %v255_v57 }
  0xec   : > { %v375_v4 = vpop.f32.mrf.mxu0  ;;  %v399_v5 = vpop.f32.mrf.mxu1 }
  0xed   : > { %423 = vst [vmem:[%s842_s4 + $0x28] sm:$0xff] %v407_v0  ;;  %431 = vst [vmem:[%s842_s4 + $0x68] sm:$0xff] %v415_v1  ;;  %v408_v6 = vmax.f32 %v374_v2, 0.0  ;;  %v416_v7 = vmax.f32 %v398_v3, 0.0  ;;  %v376_v8 = vadd.f32 %v375_v4, %v838_v23  ;;  %v400_v9 = vadd.f32 %v399_v5, %v255_v57 }
  0xef   : > { %424 = vst [vmem:[%s842_s4 + $0x30] sm:$0xff] %v408_v6  ;;  %432 = vst [vmem:[%s842_s4 + $0x70] sm:$0xff] %v416_v7  ;;  %v409_v10 = vmax.f32 %v376_v8, 0.0  ;;  %v417_v11 = vmax.f32 %v400_v9, 0.0 }
  0xf1   : > { %425 = vst [vmem:[%s842_s4 + $0x38] sm:$0xff] %v409_v10  ;;  %433 = vst [vmem:[%s842_s4 + $0x78] sm:$0xff] %v417_v11 }
  0xf2   : > { %631 = shalt.err (!%p628_p5)
}
  0xf3   : > { %s632_s21 = scalar_lea.hbm %s863_s9, 2048  ;;  %s636_s27 = scalar_lea.hbm %s921_s3, 4096 }
  0xf4   : > { %p633_p6 = scmp.ne.s32.totalorder %s863_s9, %s632_s21  ;;  %p637_p10 = scmp.lt.s32.totalorder %s863_s9, %s921_s3 }
  0xf5   : > { %p638_p11 = scmp.lt.s32.totalorder %s636_s27, %s632_s21 }
  0xf6   : > { %p634_p7 = pnand %p633_p6, %p761_p4 }
  0xf7   : > { %p639_p12 = por %p638_p11, %p637_p10 }
  0xf8   : > { %p635_p9 = pneg %p634_p7 }
  0xfa   : > { %p640_p13 = pnand %p639_p12, %p635_p9 }
  0xfc   : > { %643 = shalt.err (!%p640_p13)
}
  0xfd   : > { %s699_s30 = smov 256   ;;  %s700_s4 = smov 16  }
  0xfe   : > { %556 = dma.vmem_to_hbm [thread:$0]  (%p761_p4), %s865_s6, 2048, %s863_s9, %s873_s15, %s699_s30, %s699_s30, %s700_s4  }
  0xff PF: > { %p562_p0 = scmp.ge.s32.totalorder %s694_s17, 2  ;;  %s465_s5 = sand.u32 1, %s674_s12  }
 0x100   : > { %s466_s7 = scalar_lea.sflag [#allocation3], %s465_s5 }
 0x101   : > { %p559_p1 = pnand %p562_p0, %p768_p8 }
 0x103   : > { %p560_p2 = pneg %p559_p1 }
 0x105   : > { %669 = dma.done.wait (%p560_p2), %s466_s7, 2048  }
 0x106   : > { %671 = vsyncadd (%p560_p2), %s466_s7, 4294965248  ;;  %s16_s17 = sadd.s32 1, %s694_s17   ;;  %s924_s12 = smov %s678_s13 }
 0x107   : > { %p13_p3 = scmp.ge.s32.totalorder %s16_s17, 4   ;;  %s925_s13 = smov %s682_s14 }
 0x108   : > { %s926_s14 = smov %s774_s25  ;;  %s927_s15 = smov %s690_s16 }
 0x109   : > { %s928_s16 = smov %s930_s20  ;;  %15 = sbr.rel (!%p13_p3) target bundleno = 4 (0x4), region = 67 }
 0x10e   :  { %471 = vsyncpa [#allocation3], 1 }
 0x10f   :  { %473 = vsyncpa [#allocation3 + $0x1], 1 }

</bundles_post_ra>
